<compile_context>
chip_gen: v7x
topology: tpu7x:2x2x1
jax: 0.10.0
libtpu: 0.0.40
codegen_flags: <defaults>
</compile_context>

<pallas_src>
import math
import functools

import jax
import jax.numpy as jnp
from jax.experimental import pallas as pl
from jax.experimental.pallas import tpu as pltpu


def _round_up(x, m):
    return ((x + m - 1) // m) * m


def _cdiv(a, b):
    return -(-a // b)


def _num_tensorcores():
    """2 on v7x (two TensorCores share the 'parallel' grid axis), else 1."""
    try:
        kind = jax.devices()[0].device_kind.lower()
    except Exception:
        return 1
    return 2 if "v7" in kind else 1


# ----------------------------------------------------------------------------
# Pallas kernel: one batch tile [3, TB] -> [1, TB].
# ----------------------------------------------------------------------------
def _critic_kernel(x_ref, w1a_ref, w1b_ref, w1c_ref, b1_ref, w2_ref, b2_ref,
                   w3_ref, b3_ref, o_ref):
    x = x_ref[...]                                     # [3, TB] (batch on lanes)

    # Layer 1: K=3 contraction as three VPU broadcast FMAs (off the MXU).
    # w1 columns arrive as separate resident [H, 1] operands -> no per-tile
    # lane-slice / relayout of w1 inside the kernel.
    z1 = b1_ref[...]                                   # [H, 1] broadcasts over lanes
    z1 = z1 + w1a_ref[...] * x[0:1, :]
    z1 = z1 + w1b_ref[...] * x[1:2, :]
    z1 = z1 + w1c_ref[...] * x[2:3, :]
    h1 = jnp.tanh(z1)                                  # [H, TB]

    # Layer 2: the only real matmul (H x H) -> MXU at DEFAULT precision
    # (single-pass bf16, f32 accumulation).  Self-test tolerance is relaxed
    # to match (~1e-3 abs).
    h2 = jnp.tanh(
        jnp.dot(w2_ref[...], h1, preferred_element_type=jnp.float32)
        + b2_ref[...]                                  # [H, 1] broadcasts over lanes
    )                                                  # [H, TB]

    # Layer 3: single output row -> VPU multiply + sublane (XLU) reduction.
    # b3 comes from SMEM (scalar path).
    v = jnp.sum(h2 * w3_ref[...], axis=0, keepdims=True) + b3_ref[0]
    o_ref[...] = v                                     # [1, TB] lane-dense store


# ----------------------------------------------------------------------------
# Preferred entry: state stored features-first, [3, B] -> [B].
# ----------------------------------------------------------------------------
@functools.partial(jax.jit, static_argnames=("num_cores", "max_tb"))
def critic_forward_t(state_t, kparams, *, num_cores=1, max_tb=4096):
    w1a, w1b, w1c, b1, w2, b2, w3c, b3 = kparams
    H = w2.shape[0]
    B = state_t.shape[1]

    # As few grid steps as possible; on v7x keep (at least) 2 tiles so the
    # "parallel" batch axis can use both TensorCores.  Tile size adapts to B
    # to minimize padded-lane work.
    b128 = _round_up(max(B, 1), 128)
    n_tiles = max(_cdiv(b128, max_tb),
                  num_cores if b128 >= num_cores * 128 else 1)
    tb_eff = _round_up(_cdiv(b128, n_tiles), 128)
    grid = _cdiv(b128, tb_eff)
    b_pad = grid * tb_eff

    x_t = state_t
    if b_pad != B:
        # Tiny, fused lane-axis pad; disappears entirely if the caller keeps
        # the rollout buffer at a 128-multiple batch size.
        x_t = jnp.pad(state_t, ((0, 0), (0, b_pad - B)))

    const = lambda i: (0, 0)      # resident weights: never re-DMA'd across tiles

    cost = pl.CostEstimate(
        flops=2 * b_pad * H * (3 + H + 1),
        transcendentals=2 * b_pad * H,
        bytes_accessed=4 * (4 * b_pad + H * (H + 6) + 1),
    )

    out = pl.pallas_call(
        _critic_kernel,
        out_shape=jax.ShapeDtypeStruct((1, b_pad), jnp.float32),
        grid=(grid,),
        in_specs=[
            pl.BlockSpec((3, tb_eff), lambda i: (0, i)),        # state tile
            pl.BlockSpec((H, 1), const),                        # w1[:, 0]
            pl.BlockSpec((H, 1), const),                        # w1[:, 1]
            pl.BlockSpec((H, 1), const),                        # w1[:, 2]
            pl.BlockSpec((H, 1), const),                        # b1
            pl.BlockSpec((H, H), const),                        # w2
            pl.BlockSpec((H, 1), const),                        # b2
            pl.BlockSpec((H, 1), const),                        # w3 (column)
            pl.BlockSpec(memory_space=pltpu.MemorySpace.SMEM),  # b3 scalar
        ],
        out_specs=pl.BlockSpec((1, tb_eff), lambda i: (0, i)),
        compiler_params=pltpu.CompilerParams(
            dimension_semantics=("parallel",)),
        cost_estimate=cost,
    )(x_t, w1a, w1b, w1c, b1, w2, b2, w3c, b3)

    return out[0, :B]             # == torch .squeeze(dim=1)


# ----------------------------------------------------------------------------
# Torch-compatible entry: state [B, 3] -> [B].
# ----------------------------------------------------------------------------
@functools.partial(jax.jit, static_argnames=("num_cores", "max_tb"))
def critic_forward(state, kparams, *, num_cores=1, max_tb=4096):
    # One in-jit transpose; prefer critic_forward_t with a [3, B] rollout
    # buffer to avoid even that.
    return critic_forward_t(state.T, kparams, num_cores=num_cores, max_tb=max_tb)


# ----------------------------------------------------------------------------
# Parameters: torch.nn.Linear-style init (U(-k, k), k = 1/sqrt(fan_in)),
# kept in torch [out, in] / [out] layout, plus a one-time re-layout into the
# kernel-resident operand set.
# ----------------------------------------------------------------------------
def init_critic_params(key, hidden_size, in_features=3):
    def linear(key, fan_in, fan_out):
        kw, kb = jax.random.split(key)
        bound = 1.0 / math.sqrt(fan_in)
        w = jax.random.uniform(kw, (fan_out, fan_in), jnp.float32, -bound, bound)
        b = jax.random.uniform(kb, (fan_out,), jnp.float32, -bound, bound)
        return w, b

    k1, k2, k3 = jax.random.split(key, 3)
    w1, b1 = linear(k1, in_features, hidden_size)     # [H, 3], [H]
    w2, b2 = linear(k2, hidden_size, hidden_size)     # [H, H], [H]
    w3, b3 = linear(k3, hidden_size, 1)               # [1, H], [1]
    return (w1, b1, w2, b2, w3, b3)


def prepare_params(params):
    """One-time re-layout of torch-style params into kernel operands."""
    w1, b1, w2, b2, w3, b3 = params
    return (
        w1[:, 0:1], w1[:, 1:2], w1[:, 2:3],            # three [H, 1] columns
        b1[:, None],                                   # [H, 1]
        w2,                                            # [H, H]
        b2[:, None],                                   # [H, 1]
        w3.T,                                          # [H, 1] output column
        b3.reshape(1).astype(jnp.float32),             # (1,) SMEM scalar
    )


def critic_reference(state, params):
    """Pure-JAX f32 reference for correctness checking."""
    w1, b1, w2, b2, w3, b3 = params
    hi = jax.lax.Precision.HIGHEST
    h1 = jnp.tanh(jnp.dot(state, w1.T, precision=hi) + b1)
    h2 = jnp.tanh(jnp.dot(h1, w2.T, precision=hi) + b2)
    return (jnp.dot(h2, w3.T, precision=hi) + b3)[:, 0]


if __name__ == "__main__":
    key = jax.random.PRNGKey(0)
    k_params, k_state = jax.random.split(key)

    hidden_size = 32
    params = init_critic_params(k_params, hidden_size)
    kparams = prepare_params(params)
    num_cores = _num_tensorcores()

    # B=8: small rollout batch (single 128-lane tile, exercises padding path).
    # B=1000: larger batch -> 1x1024 tile on v5e/v6e, 2x512 tiles on v7x.
    for batch in (8, 1000):
        k_state, k = jax.random.split(k_state)
        state = jax.random.normal(k, (batch, 3), jnp.float32)
        ref = critic_reference(state, params)

        # Torch-compatible [B, 3] entry.
        value = jax.block_until_ready(
            critic_forward(state, kparams, num_cores=num_cores))
        assert value.shape == (batch,), value.shape
        # Tolerance relaxed vs f32 reference because layer 2 runs at DEFAULT
        # (single-pass bf16) MXU precision.
        assert jnp.allclose(value, ref, atol=5e-3, rtol=5e-3), float(
            jnp.max(jnp.abs(value - ref)))

        # Preferred fast path: rollout buffer already stored as [3, B].
        value_t = jax.block_until_ready(
            critic_forward_t(state.T, kparams, num_cores=num_cores))
        assert value_t.shape == (batch,), value_t.shape
        assert jnp.allclose(value_t, ref, atol=5e-3, rtol=5e-3), float(
            jnp.max(jnp.abs(value_t - ref)))

    print("KERNEL_OK")
</pallas_src>

<mosaic_0001>
module attributes {stable_mosaic.version = 11 : i64} {
  func.func @_critic_kernel(%arg0: i32, %arg1: memref<3x128xf32, #tpu.memory_space<vmem>>, %arg2: memref<32x1xf32, #tpu.memory_space<vmem>>, %arg3: memref<32x1xf32, #tpu.memory_space<vmem>>, %arg4: memref<32x1xf32, #tpu.memory_space<vmem>>, %arg5: memref<32x1xf32, #tpu.memory_space<vmem>>, %arg6: memref<32x32xf32, #tpu.memory_space<vmem>>, %arg7: memref<32x1xf32, #tpu.memory_space<vmem>>, %arg8: memref<32x1xf32, #tpu.memory_space<vmem>>, %arg9: memref<1xf32, #tpu.memory_space<smem>>, %arg10: memref<1x128xf32, #tpu.memory_space<vmem>>) attributes {dimension_semantics = [#tpu.dimension_semantics<parallel>], iteration_bounds = array<i64: 1>, scalar_prefetch = 0 : i64, scratch_operands = 0 : i64, tpu.core_type = #tpu.core_type<tc>, window_params = [{transform_indices = @transform_0, window_bounds = array<i64: 3, 128>}, {pipeline_mode = #tpu.pipeline_mode<synchronous>, transform_indices = @transform_1, window_bounds = array<i64: 32, 1>}, {pipeline_mode = #tpu.pipeline_mode<synchronous>, transform_indices = @transform_2, window_bounds = array<i64: 32, 1>}, {pipeline_mode = #tpu.pipeline_mode<synchronous>, transform_indices = @transform_3, window_bounds = array<i64: 32, 1>}, {pipeline_mode = #tpu.pipeline_mode<synchronous>, transform_indices = @transform_4, window_bounds = array<i64: 32, 1>}, {pipeline_mode = #tpu.pipeline_mode<synchronous>, transform_indices = @transform_5, window_bounds = array<i64: 32, 32>}, {pipeline_mode = #tpu.pipeline_mode<synchronous>, transform_indices = @transform_6, window_bounds = array<i64: 32, 1>}, {pipeline_mode = #tpu.pipeline_mode<synchronous>, transform_indices = @transform_7, window_bounds = array<i64: 32, 1>}, {transform_indices = @transform_8, window_bounds = array<i64: 1>}, {transform_indices = @transform_9, window_bounds = array<i64: 1, 128>}]} {
    %c0 = arith.constant 0 : index
    %c0_0 = arith.constant 0 : index
    %0 = vector.load %arg1[%c0, %c0_0] : memref<3x128xf32, #tpu.memory_space<vmem>>, vector<3x128xf32>
    %c0_1 = arith.constant 0 : index
    %c0_2 = arith.constant 0 : index
    %1 = vector.load %arg5[%c0_1, %c0_2] : memref<32x1xf32, #tpu.memory_space<vmem>>, vector<32x1xf32>
    %c0_3 = arith.constant 0 : index
    %c0_4 = arith.constant 0 : index
    %2 = vector.load %arg2[%c0_3, %c0_4] : memref<32x1xf32, #tpu.memory_space<vmem>>, vector<32x1xf32>
    %3 = vector.extract_strided_slice %0 {offsets = [0, 0], sizes = [1, 128], strides = [1, 1]} : vector<3x128xf32> to vector<1x128xf32>
    %4 = vector.broadcast %2 : vector<32x1xf32> to vector<32x128xf32>
    %5 = vector.broadcast %3 : vector<1x128xf32> to vector<32x128xf32>
    %6 = arith.mulf %4, %5 : vector<32x128xf32>
    %7 = vector.broadcast %1 : vector<32x1xf32> to vector<32x128xf32>
    %8 = arith.addf %7, %6 : vector<32x128xf32>
    %c0_5 = arith.constant 0 : index
    %c0_6 = arith.constant 0 : index
    %9 = vector.load %arg3[%c0_5, %c0_6] : memref<32x1xf32, #tpu.memory_space<vmem>>, vector<32x1xf32>
    %10 = vector.extract_strided_slice %0 {offsets = [1, 0], sizes = [1, 128], strides = [1, 1]} : vector<3x128xf32> to vector<1x128xf32>
    %11 = vector.broadcast %9 : vector<32x1xf32> to vector<32x128xf32>
    %12 = vector.broadcast %10 : vector<1x128xf32> to vector<32x128xf32>
    %13 = arith.mulf %11, %12 : vector<32x128xf32>
    %14 = arith.addf %8, %13 : vector<32x128xf32>
    %c0_7 = arith.constant 0 : index
    %c0_8 = arith.constant 0 : index
    %15 = vector.load %arg4[%c0_7, %c0_8] : memref<32x1xf32, #tpu.memory_space<vmem>>, vector<32x1xf32>
    %16 = vector.extract_strided_slice %0 {offsets = [2, 0], sizes = [1, 128], strides = [1, 1]} : vector<3x128xf32> to vector<1x128xf32>
    %17 = vector.broadcast %15 : vector<32x1xf32> to vector<32x128xf32>
    %18 = vector.broadcast %16 : vector<1x128xf32> to vector<32x128xf32>
    %19 = arith.mulf %17, %18 : vector<32x128xf32>
    %20 = arith.addf %14, %19 : vector<32x128xf32>
    %21 = math.tanh %20 : vector<32x128xf32>
    %c0_9 = arith.constant 0 : index
    %c0_10 = arith.constant 0 : index
    %22 = vector.load %arg6[%c0_9, %c0_10] : memref<32x32xf32, #tpu.memory_space<vmem>>, vector<32x32xf32>
    %cst = arith.constant dense<0.000000e+00> : vector<32x128xf32>
    %23 = tpu.matmul %22, %21, %cst {dimension_numbers = #tpu.dot_dimension_numbers<[1], [0], [0], [1], [0, 0, 1, 1], [], []>} : vector<32x32xf32>, vector<32x128xf32>, vector<32x128xf32> -> vector<32x128xf32>
    %c0_11 = arith.constant 0 : index
    %c0_12 = arith.constant 0 : index
    %24 = vector.load %arg7[%c0_11, %c0_12] : memref<32x1xf32, #tpu.memory_space<vmem>>, vector<32x1xf32>
    %25 = vector.broadcast %24 : vector<32x1xf32> to vector<32x128xf32>
    %26 = arith.addf %23, %25 : vector<32x128xf32>
    %27 = math.tanh %26 : vector<32x128xf32>
    %c0_13 = arith.constant 0 : index
    %c0_14 = arith.constant 0 : index
    %28 = vector.load %arg8[%c0_13, %c0_14] : memref<32x1xf32, #tpu.memory_space<vmem>>, vector<32x1xf32>
    %29 = vector.broadcast %28 : vector<32x1xf32> to vector<32x128xf32>
    %30 = arith.mulf %27, %29 : vector<32x128xf32>
    %cst_15 = arith.constant dense<0.000000e+00> : vector<128xf32>
    %31 = vector.multi_reduction <add>, %30, %cst_15 [0] : vector<32x128xf32> to vector<128xf32>
    %32 = vector.shape_cast %31 : vector<128xf32> to vector<1x128xf32>
    %c0_16 = arith.constant 0 : index
    %33 = memref.load %arg9[%c0_16] : memref<1xf32, #tpu.memory_space<smem>>
    %34 = vector.broadcast %33 : f32 to vector<1x128xf32>
    %35 = arith.addf %32, %34 : vector<1x128xf32>
    %c0_17 = arith.constant 0 : index
    %c0_18 = arith.constant 0 : index
    %36 = vector.load %arg10[%c0_17, %c0_18] : memref<1x128xf32, #tpu.memory_space<vmem>>, vector<1x128xf32>
    tpu.vector_store %arg10[%c0_17, %c0_18], %35 {strides = array<i32>} : memref<1x128xf32, #tpu.memory_space<vmem>>, vector<1x128xf32>,
    return
  }
  func.func @transform_0(%arg0: i32) -> (i32, i32) {
    %c0_i32 = arith.constant 0 : i32
    %c0_i32_0 = arith.constant 0 : i32
    return %c0_i32, %arg0 : i32, i32
  }
  func.func @transform_1(%arg0: i32) -> (i32, i32) {
    %c0_i32 = arith.constant 0 : i32
    %c0_i32_0 = arith.constant 0 : i32
    %c0_i32_1 = arith.constant 0 : i32
    return %c0_i32, %c0_i32_0 : i32, i32
  }
  func.func @transform_2(%arg0: i32) -> (i32, i32) {
    %c0_i32 = arith.constant 0 : i32
    %c0_i32_0 = arith.constant 0 : i32
    %c0_i32_1 = arith.constant 0 : i32
    return %c0_i32, %c0_i32_0 : i32, i32
  }
  func.func @transform_3(%arg0: i32) -> (i32, i32) {
    %c0_i32 = arith.constant 0 : i32
    %c0_i32_0 = arith.constant 0 : i32
    %c0_i32_1 = arith.constant 0 : i32
    return %c0_i32, %c0_i32_0 : i32, i32
  }
  func.func @transform_4(%arg0: i32) -> (i32, i32) {
    %c0_i32 = arith.constant 0 : i32
    %c0_i32_0 = arith.constant 0 : i32
    %c0_i32_1 = arith.constant 0 : i32
    return %c0_i32, %c0_i32_0 : i32, i32
  }
  func.func @transform_5(%arg0: i32) -> (i32, i32) {
    %c0_i32 = arith.constant 0 : i32
    %c0_i32_0 = arith.constant 0 : i32
    %c0_i32_1 = arith.constant 0 : i32
    return %c0_i32, %c0_i32_0 : i32, i32
  }
  func.func @transform_6(%arg0: i32) -> (i32, i32) {
    %c0_i32 = arith.constant 0 : i32
    %c0_i32_0 = arith.constant 0 : i32
    %c0_i32_1 = arith.constant 0 : i32
    return %c0_i32, %c0_i32_0 : i32, i32
  }
  func.func @transform_7(%arg0: i32) -> (i32, i32) {
    %c0_i32 = arith.constant 0 : i32
    %c0_i32_0 = arith.constant 0 : i32
    %c0_i32_1 = arith.constant 0 : i32
    return %c0_i32, %c0_i32_0 : i32, i32
  }
  func.func @transform_8(%arg0: i32) -> i32 {
    %c0_i32 = arith.constant 0 : i32
    %c0_i32_0 = arith.constant 0 : i32
    return %c0_i32 : i32
  }
  func.func @transform_9(%arg0: i32) -> (i32, i32) {
    %c0_i32 = arith.constant 0 : i32
    %c0_i32_0 = arith.constant 0 : i32
    return %c0_i32, %arg0 : i32, i32
  }
}

</mosaic_0001>

<bundles_post_ra>
// kernel: critic_forward_t.1
= control target key start
LH: loop header
LB: loop body
LE: loop exit
PB: predicated region body
PF: predicated region fallthrough
CT: control target
= control target key end

     0   :  { %v402_v0 = vmov 0   ;;  %vm198_vm0 = vcmask 261120   ;;  %v62_v27 = vlaneseq  ;;  %s550_s4 = inlined_call_operand.vmem [shape: f32[32,1], index: 4, kind: input, shape index: {}]   ;;  %s551_s1 = inlined_call_operand.vmem [shape: f32[32,1], index: 1, kind: input, shape index: {}]   ;;  %s552_s2 = inlined_call_operand.vmem [shape: f32[32,1], index: 2, kind: input, shape index: {}]   ;;  %s553_s3 = inlined_call_operand.vmem [shape: f32[32,1], index: 3, kind: input, shape index: {}]   ;;  %s554_s6 = inlined_call_operand.vmem [shape: f32[32,1], index: 6, kind: input, shape index: {}]   ;;  %s555_s7 = inlined_call_operand.vmem [shape: f32[32,1], index: 7, kind: input, shape index: {}]   ;;  %s556_s5 = inlined_call_operand.vmem [shape: f32[32,32], index: 5, kind: input, shape index: {}]   ;;  %s557_s0 = inlined_call_operand.vmem [shape: f32[3,128], index: 0, kind: input, shape index: {}]   ;;  %s558_s8 = inlined_call_operand.<no memory space> [shape: f32[1], index: 8, kind: input, shape index: {}]   ;;  %s559_s9 = inlined_call_operand.vmem [shape: f32[1,128], index: 9, kind: output, shape index: {}]  }
   0x1   :  { %385 = vset.pattern.permute.xlu1 %v402_v0  ;;  %384 = vset.pattern.permute.xlu0 %v402_v0  ;;  %v34_v1 = vld [vmem:[%s550_s4] sm:$0xff]  ;;  %v35_v3 = vld [vmem:[%s550_s4 + $0x8] sm:$0xff]  ;;  %v41_v7 = vld [vmem:[%s551_s1 + $0x18] sm:$0xff] }
   0x2   :  { %v38_v2 = vld [vmem:[%s551_s1] sm:$0xff]  ;;  %72 = vperm.xlu1 %385, %v34_v1   ;;  %v39_v4 = vld [vmem:[%s551_s1 + $0x8] sm:$0xff]  ;;  %v40_v8 = vld [vmem:[%s551_s1 + $0x10] sm:$0xff]  ;;  %v63_v28 = vshrl.u32 %v62_v27, 7 }
   0x3   :  { %44 = vperm.xlu0 %384, %v38_v2   ;;  %v95_v5 = vld [vmem:[%s552_s2 + $0x8] sm:$0xff]  ;;  %v94_v6 = vld [vmem:[%s552_s2] sm:$0xff]  ;;  %v37_v11 = vld [vmem:[%s550_s4 + $0x18] sm:$0xff] }
   0x4   :  { %v131_v9 = vld [vmem:[%s553_s3 + $0x8] sm:$0xff]  ;;  %v130_v10 = vld [vmem:[%s553_s3] sm:$0xff]  ;;  %v36_v12 = vld [vmem:[%s550_s4 + $0x10] sm:$0xff]  ;;  %v64_v31 = vsub.s32 0, %v63_v28  ;;  %v120_v35 = vsub.s32 1, %v63_v28  ;;  %v156_v40 = vsub.s32 2, %v63_v28 }
   0x5   :  { %v97_v13 = vld [vmem:[%s552_s2 + $0x18] sm:$0xff]  ;;  %v96_v14 = vld [vmem:[%s552_s2 + $0x10] sm:$0xff]  ;;  %v175_v17 = vld [vmem:[%s554_s6 + $0x8] sm:$0xff] }
   0x6   :  { %77 = vperm.xlu1 %385, %v35_v3   ;;  %v133_v15 = vld [vmem:[%s553_s3 + $0x18] sm:$0xff]  ;;  %v132_v16 = vld [vmem:[%s553_s3 + $0x10] sm:$0xff]  ;;  %v174_v18 = vld [vmem:[%s554_s6] sm:$0xff] }
   0x7   :  { %49 = vperm.xlu0 %384, %v39_v4   ;;  %v177_v19 = vld [vmem:[%s554_s6 + $0x18] sm:$0xff]  ;;  %v176_v20 = vld [vmem:[%s554_s6 + $0x10] sm:$0xff]  ;;  %v301_v21 = vld [vmem:[%s555_s7 + $0x8] sm:$0xff] }
   0x8   :  { %v300_v22 = vld [vmem:[%s555_s7] sm:$0xff]  ;;  %v303_v23 = vld [vmem:[%s555_s7 + $0x18] sm:$0xff]  ;;  %v302_v24 = vld [vmem:[%s555_s7 + $0x10] sm:$0xff] }
   0x9   :  { %v170_v25 = vld [vmem:[%s556_s5] sm:$0xff]  ;;  %v172_v26 = vld [vmem:[%s556_s5 + $0x10] sm:$0xff] }
   0xa   :  { %105 = vperm.xlu1 %385, %v95_v5   ;;  %365 = vmatprep.mubr.msk.f32.mxu0 %vm198_vm0, %v170_v25  ;;  %v33_v32 = vld [vmem:[%s557_s0] sm:$0x7] }
   0xb   :  { %100 = vperm.xlu0 %384, %v94_v6   ;;  %368 = vmatprep.mubr.msk.f32.mxu1 %vm198_vm0, %v172_v26  ;;  %v65_v36 = vrot.slane %v33_v32, %v64_v31  ;;  %v121_v39 = vrot.slane %v33_v32, %v120_v35  ;;  %v157_v47 = vrot.slane %v33_v32, %v156_v40 }
   0xe   :  { %59 = vperm.xlu1 %385, %v41_v7  }
   0xf   :  { %54 = vperm.xlu0 %384, %v40_v8  }
  0x12   :  { %141 = vperm.xlu1 %385, %v131_v9  }
  0x13   :  { %136 = vperm.xlu0 %384, %v130_v10  }
  0x16   :  { %87 = vperm.xlu1 %385, %v37_v11  }
  0x17   :  { %82 = vperm.xlu0 %384, %v36_v12  }
  0x1a   :  { %115 = vperm.xlu1 %385, %v97_v13  }
  0x1b   :  { %110 = vperm.xlu0 %384, %v96_v14  }
  0x1e   :  { %151 = vperm.xlu1 %385, %v133_v15  }
  0x1f   :  { %146 = vperm.xlu0 %384, %v132_v16  }
  0x22   :  { %185 = vperm.xlu1 %385, %v175_v17  }
  0x23   :  { %180 = vperm.xlu0 %384, %v174_v18   ;;  %v171_v18 = vld [vmem:[%s556_s5 + $0x8] sm:$0xff] }
  0x26   :  { %195 = vperm.xlu1 %385, %v177_v19   ;;  %v173_v19 = vld [vmem:[%s556_s5 + $0x18] sm:$0xff] }
  0x27   :  { %190 = vperm.xlu0 %384, %v176_v20  }
  0x2a   :  { %311 = vperm.xlu1 %385, %v301_v21  }
  0x2b   :  { %306 = vperm.xlu0 %384, %v300_v22  }
  0x2e   :  { %321 = vperm.xlu1 %385, %v303_v23  }
  0x2f   :  { %316 = vperm.xlu0 %384, %v302_v24  }
  0x81   :  { %v73_v29 = vpop.permute.xlu1 %72 }
  0x82   :  { %v45_v30 = vpop.permute.xlu0 %44 }
  0x83   :  { %v66_v41 = vmul.f32 %v65_v36, %v45_v30 }
  0x85   :  { %v78_v33 = vpop.permute.xlu1 %77  ;;  %v90_v48 = vadd.f32 %v73_v29, %v66_v41 }
  0x86   :  { %v50_v34 = vpop.permute.xlu0 %49 }
  0x87   :  { %v67_v42 = vmul.f32 %v65_v36, %v50_v34 }
  0x89   :  { %v106_v37 = vpop.permute.xlu1 %105  ;;  %v91_v49 = vadd.f32 %v78_v33, %v67_v42 }
  0x8a   :  { %v101_v38 = vpop.permute.xlu0 %100  ;;  %v123_v45 = vmul.f32 %v121_v39, %v106_v37 }
  0x8b   :  { %v122_v46 = vmul.f32 %v121_v39, %v101_v38 }
  0x8c   :  { %v127_v52 = vadd.f32 %v123_v45, %v91_v49 }
  0x8d   :  { %v60_v43 = vpop.permute.xlu1 %59  ;;  %v126_v53 = vadd.f32 %v122_v46, %v90_v48 }
  0x8e   :  { %v55_v44 = vpop.permute.xlu0 %54  ;;  %v69_v62 = vmul.f32 %v65_v36, %v60_v43 }
  0x8f   :  { %v68_v63 = vmul.f32 %v65_v36, %v55_v44 }
  0x91   :  { %v142_v50 = vpop.permute.xlu1 %141 }
  0x92   :  { %v137_v51 = vpop.permute.xlu0 %136  ;;  %v159_v54 = vmul.f32 %v157_v47, %v142_v50 }
  0x93   :  { %v158_v55 = vmul.f32 %v157_v47, %v137_v51 }
  0x94   :  { %v163_v56 = vadd.f32 %v159_v54, %v127_v52  ;;  %v338_v52 = vstv %s558_s8 }
  0x95   :  { %v162_v57 = vadd.f32 %v158_v55, %v126_v53  ;;  %v88_v58 = vpop.permute.xlu1 %87 }
  0x96   :  { %v83_v59 = vpop.permute.xlu0 %82  ;;  %386 = vtanh.f32 %v163_v56  ;;  %v93_v2 = vadd.f32 %v88_v58, %v69_v62 }
  0x97   :  { %388 = vtanh.f32 %v162_v57  ;;  %v92_v3 = vadd.f32 %v83_v59, %v68_v63 }
  0x99   :  { %v116_v60 = vpop.permute.xlu1 %115 }
  0x9a   :  { %v111_v61 = vpop.permute.xlu0 %110  ;;  %v125_v0 = vmul.f32 %v121_v39, %v116_v60 }
  0x9b   :  { %v124_v1 = vmul.f32 %v121_v39, %v111_v61 }
  0x9c   :  { %v129_v6 = vadd.f32 %v125_v0, %v93_v2 }
  0x9d   :  { %v152_v4 = vpop.permute.xlu1 %151  ;;  %v128_v7 = vadd.f32 %v124_v1, %v92_v3 }
  0x9e   :  { %v147_v5 = vpop.permute.xlu0 %146  ;;  %v161_v8 = vmul.f32 %v157_v47, %v152_v4 }
  0x9f   :  { %v160_v9 = vmul.f32 %v157_v47, %v147_v5 }
  0xa0   :  { %v387_v10 = vpop.eup %386  ;;  %v165_v11 = vadd.f32 %v161_v8, %v129_v6 }
  0xa1   :  { %v164_v12 = vadd.f32 %v160_v9, %v128_v7  ;;  %v389_v13 = vpop.eup %388  ;;  %v186_v21 = vpop.permute.xlu1 %185 }
  0xa2   :  { %390 = vtanh.f32 %v165_v11  ;;  %v371_v14 = vpack.c.bf16 %v387_v10, %v389_v13  ;;  %v181_v20 = vpop.permute.xlu0 %180 }
  0xa3   :  { %392 = vtanh.f32 %v164_v12 }
  0xa4   :  { %372 = vmatprep.subr.bf16.mxu0 %v371_v14  ;;  %379 = vmatprep.subr.bf16.mxu1 %v371_v14 }
  0xa5   :  { %374 = vmatpush3.bf16.msra.mxu0 %v371_v14  ;;  %381 = vmatpush3.bf16.msra.mxu1 %v371_v14  ;;  %v196_v28 = vpop.permute.xlu1 %195 }
  0xa6   :  { %v191_v22 = vpop.permute.xlu0 %190 }
  0xa9   :  { %v312_v34 = vpop.permute.xlu1 %311 }
  0xaa   :  { %v307_v32 = vpop.permute.xlu0 %306 }
  0xac   :  { %v391_v15 = vpop.eup %390 }
  0xad   :  { %v393_v16 = vpop.eup %392  ;;  %v322_v43 = vpop.permute.xlu1 %321 }
  0xae   :  { %v375_v17 = vpack.c.bf16 %v391_v15, %v393_v16  ;;  %v317_v40 = vpop.permute.xlu0 %316 }
  0xb0   :  { %376 = vmatprep.subr.bf16.mxu0 %v375_v17  ;;  %380 = vmatprep.subr.bf16.mxu1 %v375_v17 }
  0xb1   :  { %378 = vmatpush3.bf16.msra.mxu0 %v375_v17  ;;  %382 = vmatpush3.bf16.msra.mxu1 %v375_v17 }
  0xb4   :  { %366 = vmatmul.mubr.msk.f32.vlgmr.msra.gmra.mrb[0].mxu0 %vm198_vm0, %v171_v18  ;;  %369 = vmatmul.mubr.msk.f32.vlgmr.msra.gmra.mrb[0].mxu1 %vm198_vm0, %v173_v19 }
 0x187   :  { %v367_v23 = vpop.f32.mrb[0].mxu0  ;;  %v370_v24 = vpop.f32.mrb[0].mxu1 }
 0x188   :  { %v283_v25 = vadd.f32 %v367_v23, %v186_v21  ;;  %v277_v26 = vpop.f32.mrb[1].mxu0  ;;  %v287_v27 = vpop.f32.mrb[1].mxu1  ;;  %v293_v31 = vadd.f32 %v370_v24, %v196_v28 }
 0x189   :  { %v278_v29 = vadd.f32 %v277_v26, %v181_v20  ;;  %v288_v30 = vadd.f32 %v287_v27, %v191_v22 }
 0x18a   :  { %394 = vtanh.f32 %v283_v25 }
 0x18b   :  { %396 = vtanh.f32 %v278_v29 }
 0x18c   :  { %398 = vtanh.f32 %v288_v30 }
 0x18d   :  { %400 = vtanh.f32 %v293_v31 }
 0x194   :  { %v395_v33 = vpop.eup %394 }
 0x195   :  { %v325_v35 = vmul.f32 %v395_v33, %v312_v34  ;;  %v397_v36 = vpop.eup %396 }
 0x196   :  { %v399_v37 = vpop.eup %398  ;;  %v324_v38 = vmul.f32 %v397_v36, %v307_v32 }
 0x197   :  { %v401_v39 = vpop.eup %400  ;;  %v326_v42 = vmul.f32 %v399_v37, %v317_v40 }
 0x198   :  { %v328_v41 = vadd.f32 %v325_v35, %v324_v38  ;;  %v327_v44 = vmul.f32 %v401_v39, %v322_v43 }
 0x19a   :  { %v329_v45 = vadd.f32 %v328_v41, %v326_v42 }
 0x19c   :  { %v330_v46 = vadd.f32 %v329_v45, %v327_v44 }
 0x19e   :  { %v331_v47 = vrot.slane %v330_v46, 4 }
 0x1a0   :  { %v332_v48 = vadd.f32 %v331_v47, %v330_v46 }
 0x1a2   :  { %v333_v49 = vrot.slane %v332_v48, 2 }
 0x1a4   :  { %v334_v50 = vadd.f32 %v333_v49, %v332_v48 }
 0x1a6   :  { %v335_v51 = vrot.slane %v334_v50, 1 }
 0x1a8   :  { %v336_v53 = vadd.f32 %v335_v51, %v334_v50 }
 0x1aa   :  { %v339_v54 = vadd.f32 %v338_v52, %v336_v53 }
 0x1ac   :  { %340 = vst [vmem:[%s559_s9] sm:$0x1] %v339_v54 }

</bundles_post_ra>
